<compile_context>
chip_gen: v7x
topology: tpu7x:2x2x1
jax: 0.10.0
libtpu: 0.0.40
codegen_flags: <defaults>
</compile_context>

<pallas_src>
import jax
import jax.numpy as jnp
from jax.experimental import pallas as pl
from jax.experimental.pallas import tpu as pltpu


def _round_up(n, m):
    return ((n + m - 1) // m) * m


def vae_kernel(x_ref, w1_ref, b1_ref, w2_ref, b2_ref,
               w3_ref, b3_ref, w4_ref, b4_ref, eps_ref,
               recon_ref, mulogvar_ref):
    d = eps_ref.shape[1]

    x = x_ref[...]

    # ---- encoder ----
    h1 = jnp.dot(x, w1_ref[...], preferred_element_type=jnp.float32) + b1_ref[...]
    h1 = jnp.maximum(h1, 0.0)                                   # ReLU
    h2 = jnp.dot(h1, w2_ref[...], preferred_element_type=jnp.float32) + b2_ref[...]

    # mu_logvar.view(-1, 2, d): first d lanes = mu, next d lanes = logvar
    mu = h2[:, :d]
    logvar = h2[:, d:]

    # ---- reparameterise (training mode): z = mu + eps * exp(0.5 * logvar) ----
    z = mu + eps_ref[...] * jnp.exp(0.5 * logvar)

    # ---- decoder ----
    h3 = jnp.dot(z, w3_ref[...], preferred_element_type=jnp.float32) + b3_ref[...]
    h3 = jnp.maximum(h3, 0.0)                                   # ReLU
    h4 = jnp.dot(h3, w4_ref[...], preferred_element_type=jnp.float32) + b4_ref[...]
    recon_ref[...] = jax.nn.sigmoid(h4)                         # Sigmoid

    # single concatenated output; mu/logvar split happens in the wrapper
    mulogvar_ref[...] = h2


def vae_forward(x_img, params, eps, *, block_m=256):
    """x_img: (B, 1, H, W) float32; params: dict of weights ([in, out] layout);
    eps: (B, d) float32 reparameterisation noise.
    Returns (recon (B, F), mu (B, d), logvar (B, d))."""
    B = x_img.shape[0]
    F = x_img.shape[1] * x_img.shape[2] * x_img.shape[3]
    x = x_img.reshape(B, F)                                     # == x.view(-1, F)

    w1, b1, w2, b2, w3, b3, w4, b4 = (
        params["w1"], params["b1"], params["w2"], params["b2"],
        params["w3"], params["b3"], params["w4"], params["b4"],
    )
    d = w3.shape[0]
    h = w1.shape[1]

    # Row tile: multiple of 8 sublanes, capped at block_m; pad batch to a whole
    # number of tiles so every grid step sees a full (bm, F) block.
    bm = _round_up(min(block_m, _round_up(B, 8)), 8)
    Bp = _round_up(B, bm)
    if Bp != B:
        x = jnp.pad(x, ((0, Bp - B), (0, 0)))
        eps = jnp.pad(eps, ((0, Bp - B), (0, 0)))

    grid = (Bp // bm,)

    # Activations: stream one row-tile per grid step.
    row_spec = lambda cols: pl.BlockSpec((bm, cols), lambda i: (i, 0))
    # Weights / biases: constant index_map -> loaded once, VMEM-resident across steps.
    resident = lambda shape: pl.BlockSpec(shape, lambda i: (0,) * len(shape))

    recon, mu_logvar = pl.pallas_call(
        vae_kernel,
        out_shape=(
            jax.ShapeDtypeStruct((Bp, F), jnp.float32),
            jax.ShapeDtypeStruct((Bp, 2 * d), jnp.float32),
        ),
        grid=grid,
        in_specs=[
            row_spec(F),              # x
            resident((F, h)),         # w1
            resident((1, h)),         # b1
            resident((h, 2 * d)),     # w2
            resident((1, 2 * d)),     # b2
            resident((d, h)),         # w3
            resident((1, h)),         # b3
            resident((h, F)),         # w4
            resident((1, F)),         # b4
            row_spec(d),              # eps
        ],
        out_specs=(
            row_spec(F),              # recon
            row_spec(2 * d),          # mu_logvar (concatenated)
        ),
        compiler_params=pltpu.CompilerParams(
            dimension_semantics=("parallel",),   # megacore-shard the batch axis (v7x)
            vmem_limit_bytes=16 << 20,           # working set is tiny; leave headroom
        ),
    )(x, w1, b1, w2, b2, w3, b3, w4, b4, eps)

    recon = recon[:B]
    mu = mu_logvar[:B, :d]
    logvar = mu_logvar[:B, d:]
    return recon, mu, logvar


def init_params(key, flatten_size_input, d):
    """Deterministic init mimicking nn.Linear default (uniform +/- 1/sqrt(fan_in)).
    Weights are stored as [in, out] (transposed vs. PyTorch's [out, in])."""
    h = d * d
    dims = [
        ("w1", (flatten_size_input, h)), ("b1", (1, h)),
        ("w2", (h, 2 * d)),              ("b2", (1, 2 * d)),
        ("w3", (d, h)),                  ("b3", (1, h)),
        ("w4", (h, flatten_size_input)), ("b4", (1, flatten_size_input)),
    ]
    fan_in = {"w1": flatten_size_input, "b1": flatten_size_input,
              "w2": h, "b2": h, "w3": d, "b3": d, "w4": h, "b4": h}
    params = {}
    for name, shape in dims:
        key, sub = jax.random.split(key)
        bound = 1.0 / jnp.sqrt(jnp.float32(fan_in[name]))
        params[name] = jax.random.uniform(
            sub, shape, jnp.float32, minval=-bound, maxval=bound)
    return params


if __name__ == "__main__":
    # Small shapes consistent with the module: d=8, size_input=[16,16] -> F=256.
    # B=20 + block_m=8 forces padding (-> 24 rows) and 3 grid steps, exercising the
    # batch tiling / resident-weight path.
    d = 8
    H = W = 16
    F = H * W
    B = 20

    key = jax.random.PRNGKey(0)
    k_params, k_x, k_eps = jax.random.split(key, 3)

    params = init_params(k_params, F, d)
    x_img = jax.random.uniform(k_x, (B, 1, H, W), jnp.float32)      # NCHW input
    eps = jax.random.normal(k_eps, (B, d), jnp.float32)             # reparameterisation noise

    recon, mu, logvar = vae_forward(x_img, params, eps, block_m=8)
    jax.block_until_ready((recon, mu, logvar))

    assert recon.shape == (B, F)
    assert mu.shape == (B, d)
    assert logvar.shape == (B, d)

    # Pure-JAX reference check.
    x_flat = x_img.reshape(B, F)
    h1 = jnp.maximum(x_flat @ params["w1"] + params["b1"], 0.0)
    h2 = h1 @ params["w2"] + params["b2"]
    mu_ref, logvar_ref = h2[:, :d], h2[:, d:]
    z_ref = mu_ref + eps * jnp.exp(0.5 * logvar_ref)
    h3 = jnp.maximum(z_ref @ params["w3"] + params["b3"], 0.0)
    recon_ref = jax.nn.sigmoid(h3 @ params["w4"] + params["b4"])

    assert jnp.allclose(recon, recon_ref, atol=1e-5, rtol=1e-5)
    assert jnp.allclose(mu, mu_ref, atol=1e-5, rtol=1e-5)
    assert jnp.allclose(logvar, logvar_ref, atol=1e-5, rtol=1e-5)

    print("KERNEL_OK")
</pallas_src>

<mosaic_0001>
module attributes {stable_mosaic.version = 11 : i64} {
  func.func @vae_kernel(%arg0: i32, %arg1: memref<8x256xf32, #tpu.memory_space<vmem>>, %arg2: memref<256x64xf32, #tpu.memory_space<vmem>>, %arg3: memref<1x64xf32, #tpu.memory_space<vmem>>, %arg4: memref<64x16xf32, #tpu.memory_space<vmem>>, %arg5: memref<1x16xf32, #tpu.memory_space<vmem>>, %arg6: memref<8x64xf32, #tpu.memory_space<vmem>>, %arg7: memref<1x64xf32, #tpu.memory_space<vmem>>, %arg8: memref<64x256xf32, #tpu.memory_space<vmem>>, %arg9: memref<1x256xf32, #tpu.memory_space<vmem>>, %arg10: memref<8x8xf32, #tpu.memory_space<vmem>>, %arg11: memref<8x256xf32, #tpu.memory_space<vmem>>, %arg12: memref<8x16xf32, #tpu.memory_space<vmem>>) attributes {dimension_semantics = [#tpu.dimension_semantics<parallel>], iteration_bounds = array<i64: 3>, scalar_prefetch = 0 : i64, scratch_operands = 0 : i64, tpu.core_type = #tpu.core_type<tc>, window_params = [{transform_indices = @transform_0, window_bounds = array<i64: 8, 256>}, {pipeline_mode = #tpu.pipeline_mode<synchronous>, transform_indices = @transform_1, window_bounds = array<i64: 256, 64>}, {pipeline_mode = #tpu.pipeline_mode<synchronous>, transform_indices = @transform_2, window_bounds = array<i64: 1, 64>}, {pipeline_mode = #tpu.pipeline_mode<synchronous>, transform_indices = @transform_3, window_bounds = array<i64: 64, 16>}, {pipeline_mode = #tpu.pipeline_mode<synchronous>, transform_indices = @transform_4, window_bounds = array<i64: 1, 16>}, {pipeline_mode = #tpu.pipeline_mode<synchronous>, transform_indices = @transform_5, window_bounds = array<i64: 8, 64>}, {pipeline_mode = #tpu.pipeline_mode<synchronous>, transform_indices = @transform_6, window_bounds = array<i64: 1, 64>}, {pipeline_mode = #tpu.pipeline_mode<synchronous>, transform_indices = @transform_7, window_bounds = array<i64: 64, 256>}, {pipeline_mode = #tpu.pipeline_mode<synchronous>, transform_indices = @transform_8, window_bounds = array<i64: 1, 256>}, {transform_indices = @transform_9, window_bounds = array<i64: 8, 8>}, {transform_indices = @transform_10, window_bounds = array<i64: 8, 256>}, {transform_indices = @transform_11, window_bounds = array<i64: 8, 16>}]} {
    %c0 = arith.constant 0 : index
    %c0_0 = arith.constant 0 : index
    %0 = vector.load %arg1[%c0, %c0_0] : memref<8x256xf32, #tpu.memory_space<vmem>>, vector<8x256xf32>
    %c0_1 = arith.constant 0 : index
    %c0_2 = arith.constant 0 : index
    %1 = vector.load %arg2[%c0_1, %c0_2] : memref<256x64xf32, #tpu.memory_space<vmem>>, vector<256x64xf32>
    %cst = arith.constant dense<0.000000e+00> : vector<8x64xf32>
    %2 = tpu.matmul %0, %1, %cst {dimension_numbers = #tpu.dot_dimension_numbers<[1], [0], [0], [1], [0, 0, 1, 1], [], []>} : vector<8x256xf32>, vector<256x64xf32>, vector<8x64xf32> -> vector<8x64xf32>
    %c0_3 = arith.constant 0 : index
    %c0_4 = arith.constant 0 : index
    %3 = vector.load %arg3[%c0_3, %c0_4] : memref<1x64xf32, #tpu.memory_space<vmem>>, vector<1x64xf32>
    %4 = vector.broadcast %3 : vector<1x64xf32> to vector<8x64xf32>
    %5 = arith.addf %2, %4 : vector<8x64xf32>
    %cst_5 = arith.constant 0.000000e+00 : f32
    %6 = vector.broadcast %cst_5 : f32 to vector<8x64xf32>
    %7 = arith.maximumf %5, %6 : vector<8x64xf32>
    %c0_6 = arith.constant 0 : index
    %c0_7 = arith.constant 0 : index
    %8 = vector.load %arg4[%c0_6, %c0_7] : memref<64x16xf32, #tpu.memory_space<vmem>>, vector<64x16xf32>
    %cst_8 = arith.constant dense<0.000000e+00> : vector<8x16xf32>
    %9 = tpu.matmul %7, %8, %cst_8 {dimension_numbers = #tpu.dot_dimension_numbers<[1], [0], [0], [1], [0, 0, 1, 1], [], []>} : vector<8x64xf32>, vector<64x16xf32>, vector<8x16xf32> -> vector<8x16xf32>
    %c0_9 = arith.constant 0 : index
    %c0_10 = arith.constant 0 : index
    %10 = vector.load %arg5[%c0_9, %c0_10] : memref<1x16xf32, #tpu.memory_space<vmem>>, vector<1x16xf32>
    %11 = vector.broadcast %10 : vector<1x16xf32> to vector<8x16xf32>
    %12 = arith.addf %9, %11 : vector<8x16xf32>
    %13 = vector.extract_strided_slice %12 {offsets = [0, 0], sizes = [8, 8], strides = [1, 1]} : vector<8x16xf32> to vector<8x8xf32>
    %14 = vector.extract_strided_slice %12 {offsets = [0, 8], sizes = [8, 8], strides = [1, 1]} : vector<8x16xf32> to vector<8x8xf32>
    %c0_11 = arith.constant 0 : index
    %c0_12 = arith.constant 0 : index
    %15 = vector.load %arg10[%c0_11, %c0_12] : memref<8x8xf32, #tpu.memory_space<vmem>>, vector<8x8xf32>
    %cst_13 = arith.constant 5.000000e-01 : f32
    %16 = vector.broadcast %cst_13 : f32 to vector<8x8xf32>
    %17 = arith.mulf %16, %14 : vector<8x8xf32>
    %18 = math.exp %17 : vector<8x8xf32>
    %19 = arith.mulf %15, %18 : vector<8x8xf32>
    %20 = arith.addf %13, %19 : vector<8x8xf32>
    %c0_14 = arith.constant 0 : index
    %c0_15 = arith.constant 0 : index
    %21 = vector.load %arg6[%c0_14, %c0_15] : memref<8x64xf32, #tpu.memory_space<vmem>>, vector<8x64xf32>
    %cst_16 = arith.constant dense<0.000000e+00> : vector<8x64xf32>
    %22 = tpu.matmul %20, %21, %cst_16 {dimension_numbers = #tpu.dot_dimension_numbers<[1], [0], [0], [1], [0, 0, 1, 1], [], []>} : vector<8x8xf32>, vector<8x64xf32>, vector<8x64xf32> -> vector<8x64xf32>
    %c0_17 = arith.constant 0 : index
    %c0_18 = arith.constant 0 : index
    %23 = vector.load %arg7[%c0_17, %c0_18] : memref<1x64xf32, #tpu.memory_space<vmem>>, vector<1x64xf32>
    %24 = vector.broadcast %23 : vector<1x64xf32> to vector<8x64xf32>
    %25 = arith.addf %22, %24 : vector<8x64xf32>
    %cst_19 = arith.constant 0.000000e+00 : f32
    %26 = vector.broadcast %cst_19 : f32 to vector<8x64xf32>
    %27 = arith.maximumf %25, %26 : vector<8x64xf32>
    %c0_20 = arith.constant 0 : index
    %c0_21 = arith.constant 0 : index
    %28 = vector.load %arg8[%c0_20, %c0_21] : memref<64x256xf32, #tpu.memory_space<vmem>>, vector<64x256xf32>
    %cst_22 = arith.constant dense<0.000000e+00> : vector<8x256xf32>
    %29 = tpu.matmul %27, %28, %cst_22 {dimension_numbers = #tpu.dot_dimension_numbers<[1], [0], [0], [1], [0, 0, 1, 1], [], []>} : vector<8x64xf32>, vector<64x256xf32>, vector<8x256xf32> -> vector<8x256xf32>
    %c0_23 = arith.constant 0 : index
    %c0_24 = arith.constant 0 : index
    %30 = vector.load %arg9[%c0_23, %c0_24] : memref<1x256xf32, #tpu.memory_space<vmem>>, vector<1x256xf32>
    %31 = vector.broadcast %30 : vector<1x256xf32> to vector<8x256xf32>
    %32 = arith.addf %29, %31 : vector<8x256xf32>
    %33 = arith.negf %32 : vector<8x256xf32>
    %34 = math.exp %33 : vector<8x256xf32>
    %cst_25 = arith.constant 1.000000e+00 : f32
    %35 = vector.broadcast %cst_25 : f32 to vector<8x256xf32>
    %36 = arith.addf %35, %34 : vector<8x256xf32>
    %37 = arith.divf %35, %36 : vector<8x256xf32>
    %c0_26 = arith.constant 0 : index
    %c0_27 = arith.constant 0 : index
    %38 = vector.load %arg11[%c0_26, %c0_27] : memref<8x256xf32, #tpu.memory_space<vmem>>, vector<8x256xf32>
    tpu.vector_store %arg11[%c0_26, %c0_27], %37 {strides = array<i32>} : memref<8x256xf32, #tpu.memory_space<vmem>>, vector<8x256xf32>,
    %c0_28 = arith.constant 0 : index
    %c0_29 = arith.constant 0 : index
    %39 = vector.load %arg12[%c0_28, %c0_29] : memref<8x16xf32, #tpu.memory_space<vmem>>, vector<8x16xf32>
    tpu.vector_store %arg12[%c0_28, %c0_29], %12 {strides = array<i32>} : memref<8x16xf32, #tpu.memory_space<vmem>>, vector<8x16xf32>,
    return
  }
  func.func @transform_0(%arg0: i32) -> (i32, i32) {
    %c0_i32 = arith.constant 0 : i32
    %c0_i32_0 = arith.constant 0 : i32
    return %arg0, %c0_i32 : i32, i32
  }
  func.func @transform_1(%arg0: i32) -> (i32, i32) {
    %c0_i32 = arith.constant 0 : i32
    %c0_i32_0 = arith.constant 0 : i32
    %c0_i32_1 = arith.constant 0 : i32
    return %c0_i32, %c0_i32_0 : i32, i32
  }
  func.func @transform_2(%arg0: i32) -> (i32, i32) {
    %c0_i32 = arith.constant 0 : i32
    %c0_i32_0 = arith.constant 0 : i32
    %c0_i32_1 = arith.constant 0 : i32
    return %c0_i32, %c0_i32_0 : i32, i32
  }
  func.func @transform_3(%arg0: i32) -> (i32, i32) {
    %c0_i32 = arith.constant 0 : i32
    %c0_i32_0 = arith.constant 0 : i32
    %c0_i32_1 = arith.constant 0 : i32
    return %c0_i32, %c0_i32_0 : i32, i32
  }
  func.func @transform_4(%arg0: i32) -> (i32, i32) {
    %c0_i32 = arith.constant 0 : i32
    %c0_i32_0 = arith.constant 0 : i32
    %c0_i32_1 = arith.constant 0 : i32
    return %c0_i32, %c0_i32_0 : i32, i32
  }
  func.func @transform_5(%arg0: i32) -> (i32, i32) {
    %c0_i32 = arith.constant 0 : i32
    %c0_i32_0 = arith.constant 0 : i32
    %c0_i32_1 = arith.constant 0 : i32
    return %c0_i32, %c0_i32_0 : i32, i32
  }
  func.func @transform_6(%arg0: i32) -> (i32, i32) {
    %c0_i32 = arith.constant 0 : i32
    %c0_i32_0 = arith.constant 0 : i32
    %c0_i32_1 = arith.constant 0 : i32
    return %c0_i32, %c0_i32_0 : i32, i32
  }
  func.func @transform_7(%arg0: i32) -> (i32, i32) {
    %c0_i32 = arith.constant 0 : i32
    %c0_i32_0 = arith.constant 0 : i32
    %c0_i32_1 = arith.constant 0 : i32
    return %c0_i32, %c0_i32_0 : i32, i32
  }
  func.func @transform_8(%arg0: i32) -> (i32, i32) {
    %c0_i32 = arith.constant 0 : i32
    %c0_i32_0 = arith.constant 0 : i32
    %c0_i32_1 = arith.constant 0 : i32
    return %c0_i32, %c0_i32_0 : i32, i32
  }
  func.func @transform_9(%arg0: i32) -> (i32, i32) {
    %c0_i32 = arith.constant 0 : i32
    %c0_i32_0 = arith.constant 0 : i32
    return %arg0, %c0_i32 : i32, i32
  }
  func.func @transform_10(%arg0: i32) -> (i32, i32) {
    %c0_i32 = arith.constant 0 : i32
    %c0_i32_0 = arith.constant 0 : i32
    return %arg0, %c0_i32 : i32, i32
  }
  func.func @transform_11(%arg0: i32) -> (i32, i32) {
    %c0_i32 = arith.constant 0 : i32
    %c0_i32_0 = arith.constant 0 : i32
    return %arg0, %c0_i32 : i32, i32
  }
}

</mosaic_0001>

<bundles_post_ra>
// kernel: tpu_custom_call.1
= control target key start
LH: loop header
LB: loop body
LE: loop exit
PB: predicated region body
PF: predicated region fallthrough
CT: control target
= control target key end

     0   :  { %17 = vsyncpa [#allocation3], 0  ;;  %s1581_s0 = inlined_call_operand.vmem [shape: f32[24,256], index: 0, kind: input, shape index: {}]   ;;  %s1582_s1 = inlined_call_operand.vmem [shape: f32[256,64], index: 1, kind: input, shape index: {}]   ;;  %s1583_s2 = inlined_call_operand.vmem [shape: f32[1,64], index: 2, kind: input, shape index: {}]   ;;  %s1584_s3 = inlined_call_operand.vmem [shape: f32[64,16], index: 3, kind: input, shape index: {}]   ;;  %s1585_s4 = inlined_call_operand.vmem [shape: f32[1,16], index: 4, kind: input, shape index: {}]   ;;  %s1586_s5 = inlined_call_operand.vmem [shape: f32[8,64], index: 5, kind: input, shape index: {}]   ;;  %s1587_s6 = inlined_call_operand.vmem [shape: f32[1,64], index: 6, kind: input, shape index: {}]   ;;  %s1588_s7 = inlined_call_operand.vmem [shape: f32[64,256], index: 7, kind: input, shape index: {}]   ;;  %s1589_s8 = inlined_call_operand.vmem [shape: f32[1,256], index: 8, kind: input, shape index: {}]   ;;  %s1590_s9 = inlined_call_operand.vmem [shape: f32[24,8], index: 9, kind: input, shape index: {}]   ;;  %s1591_s10 = inlined_call_operand.hbm [shape: f32[24,256], index: 10, kind: output, shape index: {0}]   ;;  %s1592_s11 = inlined_call_operand.vmem [shape: f32[24,16], index: 11, kind: output, shape index: {1}]  }
   0x1   :  { %19 = vsyncpa [#allocation3 + $0x1], 0  ;;  %s1278_s17 = smov 0   ;;  %s1280_s18 = smov 0  }
   0x2   :  { %s1282_s19 = smov 0   ;;  %s1284_s20 = smov 0  }
   0x3 LB: > { %1596 = sst [smem:[#allocation5_spill]] %s1207_s19  ;;  %s1299_s21 = sadd.s32 4294967295, %s1211_s20   ;;  %s1211_s20 = sphi %s1284_s20, %s1601_s20   ;;  %s1207_s19 = sphi %s1282_s19, %s1603_s19   ;;  %s1203_s18 = sphi %s1280_s18, %s1605_s18   ;;  %s1199_s17 = sphi %s1278_s17, %s1604_s17  }
   0x4   : > { %s942_s22 = sadd.s32 4294967294, %s1211_s20   ;;  %s1303_s23 = sadd.s32 1, %s1211_s20  }
   0x5   : > { %1597 = sst [smem:[#allocation6_spill]] %s1303_s23  ;;  %s252_s24 = sadd.s32 1, %s1207_s19 }
   0x6   : > { %s249_s25 = ssub.s32 %s1211_s20, %s1303_s23  ;;  %p262_p0 = scmp.ne.s32.totalorder %s1207_s19, %s1203_s18 }
   0x7   : > { %p250_p1 = scmp.eq.s32.totalorder %s249_s25, 0  ;;  %p263_p2 = scmp.eq.s32.totalorder %s1299_s21, 2 }
   0x8   : > { %p268_p3 = scmp.ne.s32.totalorder %s1203_s18, %s1199_s17  ;;  %p269_p4 = scmp.eq.s32.totalorder %s942_s22, 2 }
   0x9   : > { %s1314_s26 = scalar_select %p250_p1, %s1207_s19, %s252_s24  }
   0xa   : > { %p1316_p5 = por %p263_p2, %p262_p0  ;;  %p1320_p6 = por %p269_p4, %p268_p3 }
   0xb   : > { %1598 = sst [smem:[#allocation7_spill]] %s1314_s26  ;;  %p945_p7 = scmp.ge.s32.totalorder %s1211_s20, 1 }
   0xc   : > { %p352_p8 = scmp.lt.s32.totalorder %s1211_s20, 4 }
   0xe   : > { %p353_p9 = pnand %p945_p7, %p352_p8 }
   0xf   : > { %v431_v0 = vld [vmem:[%s1582_s1 + $0x80] sm:$0xff] (!%p353_p9)  ;;  %v432_v1 = vld [vmem:[%s1582_s1 + $0x88] sm:$0xff] (!%p353_p9)  ;;  %p400_p10 = scmp.lt.s32.totalorder (!%p353_p9), %s1299_s21, 2  ;;  %v433_v5 = vld [vmem:[%s1582_s1 + $0x90] sm:$0xff] (!%p353_p9)  ;;  %v1213_v7 = vmov (!%p353_p9), 0.0|0.0   ;;  %vm1214_vm0 = vmmov (!%p353_p9), 0  }
  0x10   : > { %356 = sbr.rel (%p353_p9) target bundleno = 1088 (0x440), region = 60  ;;  %v415_v2 = vld [vmem:[%s1582_s1] sm:$0xff] (!%p353_p9)  ;;  %v1036_v3 = vpack.c.bf16 (!%p353_p9), %v432_v1, %v431_v0  ;;  %v416_v4 = vld [vmem:[%s1582_s1 + $0x8] sm:$0xff] (!%p353_p9)  ;;  %v434_v6 = vld [vmem:[%s1582_s1 + $0x98] sm:$0xff] (!%p353_p9)  ;;  %1068 = vmatprep.subr.bf16.mxu1 (!%p353_p9), %v1213_v7  ;;  %v1215_v63 = vmov (!%p353_p9), 0.0   ;;  %vm540_vm1 = vcmask (!%p353_p9), 523264  }
  0x11   : > { %v1038_v8 = vpack.c.bf16 (!%p353_p9), %v416_v4, %v415_v2  ;;  %v1040_v9 = vpack.c.bf16 (!%p353_p9), %v434_v6, %v433_v5  ;;  %v417_v10 = vld [vmem:[%s1582_s1 + $0x10] sm:$0xff] (!%p353_p9)  ;;  %v418_v11 = vld [vmem:[%s1582_s1 + $0x18] sm:$0xff] (!%p353_p9)  ;;  %v435_v12 = vld [vmem:[%s1582_s1 + $0xa0] sm:$0xff] (!%p353_p9)  ;;  %1028 = vmatprep.mubr.msk.f32.mxu1 (!%p353_p9), %vm1214_vm0, %v1215_v63  ;;  %vm823_vm2 = vcmask (!%p353_p9), 130048   ;;  %s1216_s22 = smov (!%p353_p9), 120   ;;  %vm632_vm3 = vcmask (!%p353_p9), 64512  }
  0x12   : > { %1037 = vmatprep.subr.bf16.mxu0 (!%p353_p9), %v1036_v3  ;;  %v436_v13 = vld [vmem:[%s1582_s1 + $0xa8] sm:$0xff] (!%p353_p9)  ;;  %v1042_v14 = vpack.c.bf16 (!%p353_p9), %v418_v11, %v417_v10  ;;  %v419_v16 = vld [vmem:[%s1582_s1 + $0x20] sm:$0xff] (!%p353_p9)  ;;  %v437_v18 = vld [vmem:[%s1582_s1 + $0xb0] sm:$0xff] (!%p353_p9) }
  0x13   : > { %1039 = vmatpush3.bf16.msra.mxu0 (!%p353_p9), %v1038_v8  ;;  %v1044_v15 = vpack.c.bf16 (!%p353_p9), %v436_v13, %v435_v12  ;;  %v420_v17 = vld [vmem:[%s1582_s1 + $0x28] sm:$0xff] (!%p353_p9)  ;;  %v438_v19 = vld [vmem:[%s1582_s1 + $0xb8] sm:$0xff] (!%p353_p9)  ;;  %v421_v22 = vld [vmem:[%s1582_s1 + $0x30] sm:$0xff] (!%p353_p9) }
  0x14   : > { %1041 = vmatprep.subr.bf16.mxu0 (!%p353_p9), %v1040_v9  ;;  %v1046_v20 = vpack.c.bf16 (!%p353_p9), %v420_v17, %v419_v16  ;;  %v1048_v21 = vpack.c.bf16 (!%p353_p9), %v438_v19, %v437_v18  ;;  %v422_v23 = vld [vmem:[%s1582_s1 + $0x38] sm:$0xff] (!%p353_p9)  ;;  %v439_v24 = vld [vmem:[%s1582_s1 + $0xc0] sm:$0xff] (!%p353_p9)  ;;  %v440_v25 = vld [vmem:[%s1582_s1 + $0xc8] sm:$0xff] (!%p353_p9) }
  0x15   : > { %v525_v27 = vld [vmem:[%s1584_s3] sm:$0xff] (!%p353_p9)  ;;  %v526_v28 = vld [vmem:[%s1584_s3 + $0x8] sm:$0xff] (!%p353_p9)  ;;  %v1050_v29 = vpack.c.bf16 (!%p353_p9), %v422_v23, %v421_v22  ;;  %v527_v31 = vld [vmem:[%s1584_s3 + $0x10] sm:$0xff] (!%p353_p9)  ;;  %v1052_v33 = vpack.c.bf16 (!%p353_p9), %v440_v25, %v439_v24 }
  0x16   : > { %v1069_v30 = vpack.c.bf16 (!%p353_p9), %v526_v28, %v525_v27  ;;  %v528_v32 = vld [vmem:[%s1584_s3 + $0x18] sm:$0xff] (!%p353_p9)  ;;  %v423_v34 = vld [vmem:[%s1582_s1 + $0x40] sm:$0xff] (!%p353_p9)  ;;  %v424_v35 = vld [vmem:[%s1582_s1 + $0x48] sm:$0xff] (!%p353_p9) }
  0x17   : > { %s1356_s24 = scalar_select %p400_p10, %s1299_s21, 2  ;;  %1043 = vmatpush3.bf16.msra.mxu0 %v1042_v14  ;;  %v441_v36 = vld [vmem:[%s1582_s1 + $0xd0] sm:$0xff]  ;;  %v442_v37 = vld [vmem:[%s1582_s1 + $0xd8] sm:$0xff]  ;;  %v1072_v38 = vpack.c.bf16 %v528_v32, %v527_v31  ;;  %v1054_v39 = vpack.c.bf16 %v424_v35, %v423_v34  ;;  %v443_v43 = vld [vmem:[%s1582_s1 + $0xe0] sm:$0xff] }
  0x18   : > { %1045 = vmatprep.subr.bf16.mxu0 %v1044_v15  ;;  %1070 = vmatpush3.bf16.msra.mxu1 %v1069_v30  ;;  %v1056_v40 = vpack.c.bf16 %v442_v37, %v441_v36  ;;  %v425_v41 = vld [vmem:[%s1582_s1 + $0x50] sm:$0xff]  ;;  %v426_v42 = vld [vmem:[%s1582_s1 + $0x58] sm:$0xff]  ;;  %v444_v44 = vld [vmem:[%s1582_s1 + $0xe8] sm:$0xff] }
  0x19   : > { %s964_s30 = sshll.u32 %s1356_s24, 4  ;;  %1071 = vmatprep.subr.bf16.mxu1 %v1213_v7  ;;  %v1058_v45 = vpack.c.bf16 %v426_v42, %v425_v41  ;;  %v1060_v46 = vpack.c.bf16 %v444_v44, %v443_v43  ;;  %v427_v47 = vld [vmem:[%s1582_s1 + $0x60] sm:$0xff]  ;;  %v428_v48 = vld [vmem:[%s1582_s1 + $0x68] sm:$0xff]  ;;  %v445_v49 = vld [vmem:[%s1582_s1 + $0xf0] sm:$0xff]  ;;  %s949_s25 = sshll.u32 %s1356_s24, 3 }
  0x1a   : > { %s1377_s23 = scalar_lea.vmem %s1581_s0, %s964_s30  ;;  %v446_v50 = vld [vmem:[%s1582_s1 + $0xf8] sm:$0xff]  ;;  %v1062_v51 = vpack.c.bf16 %v428_v48, %v427_v47  ;;  %v429_v53 = vld [vmem:[%s1582_s1 + $0x70] sm:$0xff]  ;;  %v529_v57 = vld [vmem:[%s1584_s3 + $0x20] sm:$0xff]  ;;  %s412_s15 = scalar_lea.vmem %s1592_s11, %s949_s25  ;;  %v725_v47 = vlaneseq }
  0x1b   : > { %v414_v26 = vld [vmem:[%s1377_s23 + $0x8] sm:$0xff]  ;;  %1047 = vmatpush3.bf16.msra.mxu0 %v1046_v20  ;;  %v1064_v52 = vpack.c.bf16 %v446_v50, %v445_v49  ;;  %v430_v54 = vld [vmem:[%s1582_s1 + $0x78] sm:$0xff]  ;;  %v413_v56 = vld [vmem:[%s1377_s23] sm:$0xff]  ;;  %s408_s13 = scalar_lea.vmem %s1590_s9, %s949_s25  ;;  %s391_s30 = sand.u32 1, %s1203_s18  }
  0x1c   : > { %518 = vmatprep.mubr.f32.mxu0 %v414_v26  ;;  %1049 = vmatprep.subr.bf16.mxu0 %v1048_v21  ;;  %v1066_v55 = vpack.c.bf16 %v430_v54, %v429_v53  ;;  %v530_v58 = vld [vmem:[%s1584_s3 + $0x28] sm:$0xff]  ;;  %v531_v60 = vld [vmem:[%s1584_s3 + $0x30] sm:$0xff]  ;;  %v532_v61 = vld [vmem:[%s1584_s3 + $0x38] sm:$0xff]  ;;  %v726_v48 = vshrl.u32 %v725_v47, 7  ;;  %s946_s23 = sshll.u32 %s391_s30, 4  ;;  %s965_s25 = sshll.u32 %s1299_s21, 8 }
  0x1d   : > { %1073 = vmatpush3.bf16.msra.mxu1 %v1072_v38  ;;  %v1075_v59 = vpack.c.bf16 %v530_v58, %v529_v57  ;;  %v1078_v62 = vpack.c.bf16 %v532_v61, %v531_v60  ;;  %v951_v1 = vld [vmem:[%s1583_s2] ss:$0 sm:$0xff]  ;;  %v708_v13 = vld [vmem:[%s1588_s7 + $0x8] sm:$0xff]  ;;  %v710_v14 = vld [vmem:[%s1588_s7 + $0x18] sm:$0xff]  ;;  %s1539_s14 = scalar_lea.hbm %s1591_s10, %s965_s25  ;;  %s1217_s21 = smov [#allocation2]  }
  0x1e   : > { %1074 = vmatprep.subr.bf16.mxu1 %v1213_v7  ;;  %v952_v6 = vld [vmem:[%s1585_s4] ss:$0 sm:$0xff]  ;;  %v1080_v15 = vpack.c.bf16 %v710_v14, %v708_v13  ;;  %v709_v19 = vld [vmem:[%s1588_s7 + $0x10] sm:$0xff]  ;;  %v712_v21 = vld [vmem:[%s1588_s7 + $0x28] sm:$0xff]  ;;  %v727_v49 = vsub.s32 0, %v726_v48  ;;  %s1153_s16 = sshll.u32 %s1217_s21, 4  ;;  %s1154_s16 = int_to_ptr.vmem [resolvable:$false] %s1153_s16 }
  0x1f   : > { %1051 = vmatpush3.bf16.msra.mxu0 %v1050_v29  ;;  %v624_v12 = vld [vmem:[%s1586_s5] sm:$0xff]  ;;  %v714_v22 = vld [vmem:[%s1588_s7 + $0x38] sm:$0xff]  ;;  %v713_v28 = vld [vmem:[%s1588_s7 + $0x30] sm:$0xff]  ;;  %s1155_s24 = scalar_lea.vmem %s1154_s16, 512 }
  0x20   : > { %1053 = vmatprep.subr.bf16.mxu0 %v1052_v33  ;;  %v614_v17 = vld [vmem:[%s408_s13] sm:$0xff]  ;;  %v1084_v26 = vpack.c.bf16 %v714_v22, %v712_v21  ;;  %v716_v29 = vld [vmem:[%s1588_s7 + $0x48] sm:$0xff]  ;;  %v718_v30 = vld [vmem:[%s1588_s7 + $0x58] sm:$0xff] }
  0x21   : > { %1076 = vmatpush3.bf16.msra.mxu1 %v1075_v59  ;;  %v707_v18 = vld [vmem:[%s1588_s7] sm:$0xff]  ;;  %v1088_v32 = vpack.c.bf16 %v718_v30, %v716_v29  ;;  %v717_v34 = vld [vmem:[%s1588_s7 + $0x50] sm:$0xff]  ;;  %v720_v36 = vld [vmem:[%s1588_s7 + $0x68] sm:$0xff] }
  0x22   : > { %1077 = vmatprep.subr.bf16.mxu1 %v1213_v7  ;;  %v1082_v24 = vpack.c.bf16 %v709_v19, %v707_v18  ;;  %v711_v27 = vld [vmem:[%s1588_s7 + $0x20] sm:$0xff]  ;;  %v722_v37 = vld [vmem:[%s1588_s7 + $0x78] sm:$0xff] }
  0x23   : > { %1055 = vmatpush3.bf16.msra.mxu0 %v1054_v39  ;;  %v1086_v31 = vpack.c.bf16 %v713_v28, %v711_v27  ;;  %v715_v33 = vld [vmem:[%s1588_s7 + $0x40] sm:$0xff]  ;;  %v1092_v38 = vpack.c.bf16 %v722_v37, %v720_v36 }
  0x24   : > { %1057 = vmatprep.subr.bf16.mxu0 %v1056_v40  ;;  %v1090_v35 = vpack.c.bf16 %v717_v34, %v715_v33  ;;  %v719_v39 = vld [vmem:[%s1588_s7 + $0x60] sm:$0xff]  ;;  %v721_v40 = vld [vmem:[%s1588_s7 + $0x70] sm:$0xff] }
  0x25   : > { %1079 = vmatpush3.bf16.msra.mxu1 %v1078_v62  ;;  %v1094_v41 = vpack.c.bf16 %v721_v40, %v719_v39  ;;  %v954_v42 = vld [vmem:[%s1587_s6] ss:$0 sm:$0xff] }
  0x26   : > { %1031 = vmatprep.subr.mxu1 %v1215_v63  ;;  %v723_v50 = vld [vmem:[%s1589_s8] sm:$0x3] }
  0x27   : > { %1059 = vmatpush3.bf16.msra.mxu0 %v1058_v45 }
  0x28   : > { %1061 = vmatprep.subr.bf16.mxu0 %v1060_v46 }
  0x2b   : > { %1063 = vmatpush3.bf16.msra.mxu0 %v1062_v51  ;;  %v731_v51 = vsub.s32 1, %v726_v48 }
  0x2c   : > { %1065 = vmatprep.subr.bf16.mxu0 %v1064_v52  ;;  %v728_v52 = vrot.slane %v723_v50, %v727_v49 }
  0x2d   : > { %v732_v53 = vrot.slane %v723_v50, %v731_v51 }
  0x2f   : > { %1067 = vmatpush3.bf16.msra.mxu0 %v1066_v55 }
  0x32   : > { %519 = vmatmul.mubr.f32.vlgmr.msra.gmra.mrb[0].mxu0 %v413_v56 }
 0x105   : > { %v998_v0 = vpop.f32.mrb[0].mxu0 }
 0x106   : > { %v999_v2 = vpop.f32.mrb[1].mxu0 }
 0x107   : > { %v1000_v3 = vadd.f32 %v999_v2, %v998_v0 }
 0x109   : > { %v521_v4 = vadd.f32 %v1000_v3, %v951_v1 }
 0x10b   : > { %v524_v5 = vmax.f32 %v521_v4, 0.0 }
 0x10d   : > { %1029 = vmatmul.mubr.msk.f32.vlgmr.msra.gmra.mrb[0].mxu1 %vm540_vm1, %v524_v5 }
 0x10e   : > { %1033 = vmatprep.mubr.msk.f32.mxu1 %vm1214_vm0, %v1215_v63  ;;  %1032 = vmatpush3.msra.mxu1 %v624_v12 }
 0x10f   : > { %1081 = vmatprep.subr.bf16.mxu1 %v1080_v15 }
 0x1e0   : > { %v610_v7 = vpop.f32.mrb[0].mxu1 }
 0x1e1   : > { %v611_v8 = vadd.f32 %v952_v6, %v610_v7  ;;  %v1030_v9 = vpop.f32.mrb[1].mxu1 }
 0x1e3   : > { %v615_v10 = vmul.f32 0.5, %v611_v8  ;;  %824 = vst.msk [vmem:[%s412_s15] sm:$0xff] %vm823_vm2, %v611_v8  ;;  %s826_s15 = scalar_lea.sflag [#allocation3], %s391_s30 }
 0x1e5   : > { %v616_v11 = vmul.f32 1.442695, %v615_v10 }
 0x1e7   : > { %1139 = vpow2.f32 %v616_v11 }
 0x1f1   : > { %v1140_v16 = vpop.eup %1139 }
 0x1f2   : > { %619 = vrot.lane.b32.xlu0 %v1140_v16, %s1216_s22  ;;  %s393_s22 = scalar_lea.vmem [#allocation2], %s946_s23 }
 0x1f3   : > { %s844_s29 = sshll.u32 %s393_s22, 4  ;;  %s1541_s29 = int_to_ptr.vmem [resolvable:$true] %s844_s29 }
 0x1f4   : > { %s1149_s26 = scalar_lea.vmem %s1541_s29, 256  ;;  %p1156_p0 = scmp.lt.s32.totalorder %s1541_s29, %s1154_s16 }
 0x1f5   : > { %p1150_p11 = scmp.ne.s32.totalorder %s1541_s29, %s1149_s26  ;;  %p1157_p1 = scmp.lt.s32.totalorder %s1155_s24, %s1149_s26 }
 0x1f7   : > { %p1151_p12 = pnand %p1150_p11, %p1316_p5  ;;  %p1158_p2 = por %p1157_p1, %p1156_p0 }
 0x1f9   : > { %p1152_p13 = pneg %p1151_p12 }
 0x1fb   : > { %p1159_p3 = pnand %p1158_p2, %p1152_p13 }
 0x264   : > { %v620_v20 = vpop.permute.xlu0 %619 }
 0x265   : > { %v622_v23 = vmul.f32 %v620_v20, %v614_v17 }
 0x267   : > { %v623_v25 = vadd.f32 %v622_v23, %v611_v8 }
 0x269   : > { %1034 = vmatmul.mubr.msk.f32.vlgmr.msra.gmra.mrb[2].mxu1 %vm632_vm3, %v623_v25 }
 0x26a   : > { %1083 = vmatpush1.bf16.msra.mxu1 %v1082_v24  ;;  %802 = vmatprep.mubr.f32.mxu1 %v1215_v63 }
 0x26b   : > { %1085 = vmatprep.subr.bf16.mxu1 %v1084_v26 }
 0x26e   : > { %1087 = vmatpush1.bf16.msra.mxu1 %v1086_v31 }
 0x26f   : > { %1089 = vmatprep.subr.bf16.mxu1 %v1088_v32 }
 0x272   : > { %1091 = vmatpush1.bf16.msra.mxu1 %v1090_v35 }
 0x273   : > { %1093 = vmatprep.subr.bf16.mxu1 %v1092_v38 }
 0x276   : > { %1095 = vmatpush1.bf16.msra.mxu1 %v1094_v41 }
 0x33c   : > { %v702_v43 = vpop.f32.mrb[2].mxu1 }
 0x33d   : > { %v703_v44 = vadd.f32 %v954_v42, %v702_v43  ;;  %v1035_v45 = vpop.f32.mrb[3].mxu1 }
 0x33f   : > { %v706_v46 = vmax.f32 %v703_v44, 0.0 }
 0x341   : > { %956 = vmatmul.mubr.msk.f32.vlgmr.msra.gmra.mrb[4].mxu1 %vm540_vm1, %v706_v46 }
 0x414   : > { %v804_v54 = vpop.f32.mrb[4].mxu1 }
 0x415   : > { %v805_v55 = vadd.f32 %v804_v54, %v728_v52  ;;  %v806_v56 = vpop.f32.mrb[5].mxu1 }
 0x416   : > { %v807_v57 = vadd.f32 %v806_v56, %v732_v53 }
 0x417   : > { %v957_v58 = vmul.f32 -1.442695, %v805_v55 }
 0x418   : > { %v958_v59 = vmul.f32 -1.442695, %v807_v57 }
 0x419   : > { %1141 = vpow2.f32 %v957_v58 }
 0x41a   : > { %1143 = vpow2.f32 %v958_v59 }
 0x423   : > { %v1142_v60 = vpop.eup %1141 }
 0x424   : > { %v1144_v61 = vpop.eup %1143  ;;  %v815_v62 = vadd.f32 1.0, %v1142_v60 }
 0x425   : > { %v816_v63 = vadd.f32 1.0, %v1144_v61 }
 0x426   : > { %1145 = vrcp.f32 %v815_v62 }
 0x427   : > { %1147 = vrcp.f32 %v816_v63 }
 0x430   : > { %v1146_v0 = vpop.eup %1145 }
 0x431   : > { %v1148_v1 = vpop.eup %1147  ;;  %821 = vst [vmem:[%s393_s22] sm:$0xff] %v1146_v0 }
 0x432   : > { %822 = vst [vmem:[%s393_s22 + $0x8] sm:$0xff] %v1148_v1 }
 0x433   : > { %1162 = shalt.err (!%p1159_p3)
}
 0x434   : > { %s1163_s19 = scalar_lea.hbm %s1539_s14, 256  ;;  %s1167_s25 = scalar_lea.hbm %s1591_s10, 768 }
 0x435   : > { %p1164_p4 = scmp.ne.s32.totalorder %s1539_s14, %s1163_s19  ;;  %p1168_p9 = scmp.lt.u32.totalorder %s1539_s14, %s1591_s10 }
 0x436   : > { %p1169_p10 = scmp.lt.u32.totalorder %s1167_s25, %s1163_s19  ;;  %p1171_p12 = scmp.lt.u32.totalorder %s1163_s19, %s1539_s14 }
 0x437   : > { %p1165_p7 = pnand %p1164_p4, %p1316_p5 }
 0x438   : > { %p1170_p11 = por %p1169_p10, %p1168_p9 }
 0x439   : > { %p1166_p8 = pneg %p1165_p7 }
 0x43a   : > { %p1172_p13 = por %p1171_p12, %p1170_p11 }
 0x43c   : > { %p1173_p0 = pnand %p1172_p13, %p1166_p8 }
 0x43e   : > { %1176 = shalt.err (!%p1173_p0)
}
 0x43f   : > { %1096 = dma.vmem_to_hbm [thread:$0]  (%p1316_p5), %s1541_s29, 256, %s1539_s14, %s826_s15  }
 0x440 PF: > { %p1102_p1 = scmp.ge.s32.totalorder %s1211_s20, 2  ;;  %s859_s13 = sand.u32 1, %s1199_s17  }
 0x441   : > { %s860_s26 = scalar_lea.sflag [#allocation3], %s859_s13 }
 0x442   : > { %p1099_p2 = pnand %p1102_p1, %p1320_p6 }
 0x444   : > { %1194 = dma.done.wait (!%p1099_p2), %s860_s26, 256  }
 0x445   : > { %1196 = vsyncadd (!%p1099_p2), %s860_s26, 4294967040  ;;  %s1601_s20 = sld [smem:[#allocation6_spill]]  ;;  %s1602_s21 = sld [smem:[#allocation5_spill]] }
 0x446   : > { %s1603_s19 = sld [smem:[#allocation7_spill]]  ;;  %s1604_s17 = smov %s1203_s18 }
 0x44b   : > { %p22_p3 = scmp.ge.s32.totalorder %s1601_s20, 5   ;;  %s1605_s18 = smov %s1602_s21 }
 0x44d   :  { %24 = sbr.rel (!%p22_p3) target bundleno = 3 (0x3), region = 110 }
 0x454   :  { %872 = vsyncpa [#allocation3], 1 }
 0x455   :  { %874 = vsyncpa [#allocation3 + $0x1], 1 }

</bundles_post_ra>
